<compile_context>
chip_gen: v7x
topology: tpu7x:2x2x1
jax: 0.10.0
libtpu: 0.0.40
codegen_flags: <defaults>
</compile_context>

<pallas_src>
from functools import partial

import jax
import jax.numpy as jnp
from jax import lax
from jax.experimental import pallas as pl
from jax.experimental.pallas import tpu as pltpu


def _round_up(n, m):
    return ((n + m - 1) // m) * m


def _actor_critic_fused_kernel(x_ref, w_ref, out_ref, *, num_inputs, w1_rows, num_actions):
    # x_ref  : (TB, F)               raw observations, no augmentation
    # w_ref  : (w1_rows + L, L)      rows [0:F]   = layer-1 weights (critic|actor|0-pad)
    #                                row  F       = layer-1 biases (+ constant-1 col at 2H)
    #                                rows [w1_rows : w1_rows+L] = block-diag layer-2
    #                                weights, with row (w1_rows + 2H) = layer-2 biases
    # out_ref: (TB, L)               col 0 = value, cols 1..A = probs, rest = 0
    F = num_inputs
    A = num_actions

    x = x_ref[...]
    w1 = w_ref[:F, :]                      # (F, L)
    b1 = w_ref[F:F + 1, :]                 # (1, L)  layer-1 bias row (+ const-1 passthrough)
    w2 = w_ref[w1_rows:, :]                # (L, L)  8-aligned sublane start

    # Layer 1: MXU matmul + VPU broadcast bias add + ReLU.
    h = jnp.dot(x, w1, preferred_element_type=jnp.float32) + b1.astype(jnp.float32)
    h = jnp.maximum(h, 0.0)                # const-1 column (index 2H) stays 1 through ReLU

    # Layer 2: block-diagonal matmul; the const-1 hidden column applies layer-2 biases.
    out = jnp.dot(h.astype(w2.dtype), w2, preferred_element_type=jnp.float32)
    # out[:, 0] = critic value, out[:, 1:1+A] = actor logits, out[:, 1+A:] = 0.

    # Softmax over the action columns only (value col 0 and zero-pad cols excluded).
    col = lax.broadcasted_iota(jnp.int32, out.shape, 1)
    is_action = (col >= 1) & (col < 1 + A)
    masked = jnp.where(is_action, out, jnp.float32(-jnp.inf))
    m = jnp.max(masked, axis=1, keepdims=True)
    e = jnp.exp(masked - m)                # excluded columns -> exp(-inf) = 0
    denom = jnp.sum(e, axis=1, keepdims=True)
    probs = e / denom                      # exact softmax (probs may feed log_prob/entropy)

    # One merged lane-dense (TB, 128k) store: [value | probs | zeros].
    out_ref[...] = jnp.where(is_action, probs, out).astype(out_ref.dtype)


def actor_critic_forward(x, packed, *, block_b=2048, min_split=512):
    """x: (B, num_inputs). packed: output of pack_params().

    Returns (probs, value) of shapes (B, num_outputs) and (B, 1).
    """
    W = packed["w"]
    F = packed["num_inputs"]
    A = packed["num_outputs"]
    w1_rows = packed["w1_rows"]
    L = W.shape[1]
    B = x.shape[0]
    assert x.shape[1] == F and W.shape[0] == w1_rows + L

    # Tile sizing:
    #  - pick the number of grid steps first, then split B as evenly as possible
    #    (minimizes padded rows at awkward batch sizes, e.g. B=520),
    #  - force >= 2 steps once B >= min_split so v7x's two TensorCores both engage,
    #  - cap the tile at block_b rows; a (block_b, 128)-padded f32 tile is ~1 MB per
    #    buffer, so double-buffered in/out tiles stay far below even v5e's 16 MiB
    #    scoped-VMEM default (raise vmem_limit_bytes only if block_b is pushed >> 4K).
    n_steps = max(1, pl.cdiv(B, block_b))
    if B >= min_split:
        n_steps = max(2, n_steps)
    tb = _round_up(pl.cdiv(B, n_steps), 8)
    b_pad = _round_up(B, tb)
    if b_pad != B:
        # Padded rows compute garbage (they still get biases) but are sliced off below.
        x = jnp.pad(x, ((0, b_pad - B), (0, 0)))
    grid = (b_pad // tb,)

    kernel = partial(_actor_critic_fused_kernel,
                     num_inputs=F, w1_rows=w1_rows, num_actions=A)

    out = pl.pallas_call(
        kernel,
        out_shape=jax.ShapeDtypeStruct((b_pad, L), jnp.float32),
        grid=grid,
        in_specs=[
            pl.BlockSpec((tb, F), lambda i: (i, 0)),
            pl.BlockSpec(W.shape, lambda i: (0, 0)),   # full fused weights, resident block
        ],
        out_specs=pl.BlockSpec((tb, L), lambda i: (i, 0)),
        compiler_params=pltpu.CompilerParams(dimension_semantics=("parallel",)),
    )(x, W)

    value = out[:B, :1]
    probs = out[:B, 1:1 + A]
    # TODO(synk): for per-env-step inference (tiny B every call), keep the ~70 KB fused
    # weight buffer resident in VMEM across calls (cross-call prefetch / persistent
    # scratch) instead of re-DMAing it each pallas_call, and fold these slices into
    # dedicated kernel outputs.
    # Note: for large-batch training rollouts, passing x and packing W in bfloat16
    # halves input-DMA bytes; the kernel keeps f32 MXU accumulation and f32 softmax.
    return probs, value


def init_raw_params(key, num_inputs, num_outputs, hidden_size):
    """PyTorch nn.Linear-style init (U[-1/sqrt(fan_in), +1/sqrt(fan_in)]).
    Weights stored as (in_features, out_features) == transposed PyTorch layout."""
    ks = jax.random.split(key, 8)

    def lin(kw, kb, fan_in, fan_out):
        bound = 1.0 / jnp.sqrt(jnp.float32(fan_in))
        w = jax.random.uniform(kw, (fan_in, fan_out), jnp.float32, -bound, bound)
        b = jax.random.uniform(kb, (fan_out,), jnp.float32, -bound, bound)
        return w, b

    w1c, b1c = lin(ks[0], ks[1], num_inputs, hidden_size)
    w2c, b2c = lin(ks[2], ks[3], hidden_size, 1)
    w1a, b1a = lin(ks[4], ks[5], num_inputs, hidden_size)
    w2a, b2a = lin(ks[6], ks[7], hidden_size, num_outputs)
    return dict(w1c=w1c, b1c=b1c, w2c=w2c, b2c=b2c,
                w1a=w1a, b1a=b1a, w2a=w2a, b2a=b2a)


def pack_params(p, num_inputs, num_outputs, hidden_size, dtype=jnp.float32):
    """Pack all 8 per-layer tensors into ONE fused, lane-dense weight buffer.

    Layout (L = lane width, a multiple of 128 >= max(2H+1, 1+A)):
      rows [0:F]                : layer-1 weights, cols [0:H] critic, [H:2H] actor
      row  F                    : layer-1 biases; col 2H = 1.0 (constant passthrough)
      rows [F+1 : w1_rows]      : zero padding so the layer-2 block starts 8-aligned
      rows [w1_rows : w1_rows+L]: layer-2 block-diagonal weights (col 0 = value head,
                                  cols 1..A = actor logits); row w1_rows+2H = biases
    """
    F, H, A = num_inputs, num_outputs and hidden_size, num_outputs  # keep names explicit
    H = hidden_size
    L = _round_up(max(2 * H + 1, 1 + A), 128)
    w1_rows = _round_up(F + 1, 8)

    W = jnp.zeros((w1_rows + L, L), jnp.float32)
    # Layer 1 weights + bias row.
    W = W.at[:F, :H].set(p["w1c"])
    W = W.at[F, :H].set(p["b1c"])
    W = W.at[:F, H:2 * H].set(p["w1a"])
    W = W.at[F, H:2 * H].set(p["b1a"])
    W = W.at[F, 2 * H].set(1.0)            # constant-1 hidden column -> layer-2 bias fold
    # Layer 2 block-diagonal weights + bias row.
    r0 = w1_rows
    W = W.at[r0:r0 + H, 0].set(p["w2c"][:, 0])
    W = W.at[r0 + 2 * H, 0].set(p["b2c"][0])
    W = W.at[r0 + H:r0 + 2 * H, 1:1 + A].set(p["w2a"])
    W = W.at[r0 + 2 * H, 1:1 + A].set(p["b2a"])

    return dict(w=W.astype(dtype), num_inputs=F, num_outputs=A,
                hidden=H, w1_rows=w1_rows)


def reference_forward(x, p):
    hc = jnp.maximum(x @ p["w1c"] + p["b1c"], 0.0)
    value = hc @ p["w2c"] + p["b2c"]
    ha = jnp.maximum(x @ p["w1a"] + p["b1a"], 0.0)
    logits = ha @ p["w2a"] + p["b2a"]
    probs = jax.nn.softmax(logits, axis=1)
    return probs, value


if __name__ == "__main__":
    # CartPole-v1: num_inputs=4 observations, num_outputs=2 actions.
    NUM_INPUTS, NUM_OUTPUTS, HIDDEN = 4, 2, 32

    key = jax.random.PRNGKey(0)
    k_x, k_x2, k_p = jax.random.split(key, 3)
    raw = init_raw_params(k_p, NUM_INPUTS, NUM_OUTPUTS, HIDDEN)
    packed = pack_params(raw, NUM_INPUTS, NUM_OUTPUTS, HIDDEN)

    # Small per-step inference batch (grid = 1, no padding).
    B = 8
    x = jax.random.normal(k_x, (B, NUM_INPUTS), dtype=jnp.float32)
    probs, value = jax.block_until_ready(actor_critic_forward(x, packed))
    probs_ref, value_ref = reference_forward(x, raw)
    assert probs.shape == (B, NUM_OUTPUTS) and value.shape == (B, 1)
    assert jnp.allclose(value, value_ref, atol=1e-5, rtol=1e-5)
    assert jnp.allclose(probs, probs_ref, atol=1e-5, rtol=1e-5)
    assert jnp.allclose(jnp.sum(probs, axis=1), 1.0, atol=1e-5)

    # Awkward larger batch: exercises the >=2-step split (v7x megacore) + padding path.
    B2 = 600
    x2 = jax.random.normal(k_x2, (B2, NUM_INPUTS), dtype=jnp.float32)
    probs2, value2 = jax.block_until_ready(actor_critic_forward(x2, packed))
    probs2_ref, value2_ref = reference_forward(x2, raw)
    assert probs2.shape == (B2, NUM_OUTPUTS) and value2.shape == (B2, 1)
    assert jnp.allclose(value2, value2_ref, atol=1e-5, rtol=1e-5)
    assert jnp.allclose(probs2, probs2_ref, atol=1e-5, rtol=1e-5)

    # TODO(synk): torch.distributions.Categorical (sampling/log_prob) is host-side
    # glue; the kernel returns its defining `probs` tensor.
    print("KERNEL_OK")
</pallas_src>

<mosaic_0001>
module attributes {stable_mosaic.version = 11 : i64} {
  func.func @_actor_critic_fused_kernel(%arg0: i32, %arg1: memref<8x4xf32, #tpu.memory_space<vmem>>, %arg2: memref<136x128xf32, #tpu.memory_space<vmem>>, %arg3: memref<8x128xf32, #tpu.memory_space<vmem>>) attributes {dimension_semantics = [#tpu.dimension_semantics<parallel>], iteration_bounds = array<i64: 1>, scalar_prefetch = 0 : i64, scratch_operands = 0 : i64, tpu.core_type = #tpu.core_type<tc>, window_params = [{transform_indices = @transform_0, window_bounds = array<i64: 8, 4>}, {pipeline_mode = #tpu.pipeline_mode<synchronous>, transform_indices = @transform_1, window_bounds = array<i64: 136, 128>}, {transform_indices = @transform_2, window_bounds = array<i64: 8, 128>}]} {
    %c0 = arith.constant 0 : index
    %c0_0 = arith.constant 0 : index
    %0 = vector.load %arg1[%c0, %c0_0] : memref<8x4xf32, #tpu.memory_space<vmem>>, vector<8x4xf32>
    %c0_1 = arith.constant 0 : index
    %c0_2 = arith.constant 0 : index
    %1 = vector.load %arg2[%c0_1, %c0_2] : memref<136x128xf32, #tpu.memory_space<vmem>>, vector<4x128xf32>
    %c4 = arith.constant 4 : index
    %c0_3 = arith.constant 0 : index
    %2 = vector.load %arg2[%c4, %c0_3] : memref<136x128xf32, #tpu.memory_space<vmem>>, vector<1x128xf32>
    %c8 = arith.constant 8 : index
    %c0_4 = arith.constant 0 : index
    %3 = vector.load %arg2[%c8, %c0_4] : memref<136x128xf32, #tpu.memory_space<vmem>>, vector<128x128xf32>
    %cst = arith.constant dense<0.000000e+00> : vector<8x128xf32>
    %4 = tpu.matmul %0, %1, %cst {dimension_numbers = #tpu.dot_dimension_numbers<[1], [0], [0], [1], [0, 0, 1, 1], [], []>} : vector<8x4xf32>, vector<4x128xf32>, vector<8x128xf32> -> vector<8x128xf32>
    %5 = vector.broadcast %2 : vector<1x128xf32> to vector<8x128xf32>
    %6 = arith.addf %4, %5 : vector<8x128xf32>
    %cst_5 = arith.constant 0.000000e+00 : f32
    %7 = vector.broadcast %cst_5 : f32 to vector<8x128xf32>
    %8 = arith.maximumf %6, %7 : vector<8x128xf32>
    %cst_6 = arith.constant dense<0.000000e+00> : vector<8x128xf32>
    %9 = tpu.matmul %8, %3, %cst_6 {dimension_numbers = #tpu.dot_dimension_numbers<[1], [0], [0], [1], [0, 0, 1, 1], [], []>} : vector<8x128xf32>, vector<128x128xf32>, vector<8x128xf32> -> vector<8x128xf32>
    %10 = tpu.iota {dimensions = array<i32: 1>} : vector<8x128xi32>
    %c1_i32 = arith.constant 1 : i32
    %11 = vector.broadcast %c1_i32 : i32 to vector<8x128xi32>
    %12 = arith.cmpi sge, %10, %11 : vector<8x128xi32>
    %c3_i32 = arith.constant 3 : i32
    %13 = vector.broadcast %c3_i32 : i32 to vector<8x128xi32>
    %14 = arith.cmpi slt, %10, %13 : vector<8x128xi32>
    %15 = arith.andi %12, %14 : vector<8x128xi1>
    %cst_7 = arith.constant 0xFF800000 : f32
    %16 = vector.broadcast %cst_7 : f32 to vector<8x128xf32>
    %17 = arith.select %15, %9, %16 : vector<8x128xi1>, vector<8x128xf32>
    %cst_8 = arith.constant dense<0xFF800000> : vector<8xf32>
    %18 = vector.multi_reduction <maximumf>, %17, %cst_8 [1] : vector<8x128xf32> to vector<8xf32>
    %19 = vector.shape_cast %18 : vector<8xf32> to vector<8x1xf32>
    %20 = vector.broadcast %19 : vector<8x1xf32> to vector<8x128xf32>
    %21 = arith.subf %17, %20 : vector<8x128xf32>
    %22 = math.exp %21 : vector<8x128xf32>
    %cst_9 = arith.constant dense<0.000000e+00> : vector<8xf32>
    %23 = vector.multi_reduction <add>, %22, %cst_9 [1] : vector<8x128xf32> to vector<8xf32>
    %24 = vector.shape_cast %23 : vector<8xf32> to vector<8x1xf32>
    %25 = vector.broadcast %24 : vector<8x1xf32> to vector<8x128xf32>
    %26 = arith.divf %22, %25 : vector<8x128xf32>
    %27 = arith.select %15, %26, %9 : vector<8x128xi1>, vector<8x128xf32>
    %c0_10 = arith.constant 0 : index
    %c0_11 = arith.constant 0 : index
    %28 = vector.load %arg3[%c0_10, %c0_11] : memref<8x128xf32, #tpu.memory_space<vmem>>, vector<8x128xf32>
    tpu.vector_store %arg3[%c0_10, %c0_11], %27 {strides = array<i32>} : memref<8x128xf32, #tpu.memory_space<vmem>>, vector<8x128xf32>,
    return
  }
  func.func @transform_0(%arg0: i32) -> (i32, i32) {
    %c0_i32 = arith.constant 0 : i32
    %c0_i32_0 = arith.constant 0 : i32
    return %arg0, %c0_i32 : i32, i32
  }
  func.func @transform_1(%arg0: i32) -> (i32, i32) {
    %c0_i32 = arith.constant 0 : i32
    %c0_i32_0 = arith.constant 0 : i32
    %c0_i32_1 = arith.constant 0 : i32
    return %c0_i32, %c0_i32_0 : i32, i32
  }
  func.func @transform_2(%arg0: i32) -> (i32, i32) {
    %c0_i32 = arith.constant 0 : i32
    %c0_i32_0 = arith.constant 0 : i32
    return %arg0, %c0_i32 : i32, i32
  }
}

</mosaic_0001>

<bundles_post_ra>
// kernel: tpu_custom_call.1
= control target key start
LH: loop header
LB: loop body
LE: loop exit
PB: predicated region body
PF: predicated region fallthrough
CT: control target
= control target key end

     0   :  { %7 = vsyncpa [#allocation3], 0  ;;  %s432_s0 = inlined_call_operand.vmem [shape: f32[8,4], index: 0, kind: input, shape index: {}]   ;;  %s433_s1 = inlined_call_operand.hbm [shape: f32[136,128], index: 1, kind: input, shape index: {}]   ;;  %s434_s2 = inlined_call_operand.hbm [shape: f32[8,128], index: 2, kind: output, shape index: {}]  }
   0x1   :  { %8 = vsyncpa [#allocation4], 0  ;;  %s375_s9 = smov [#allocation2]   ;;  %s327_s13 = scalar_lea.hbm %s433_s1, 2176 }
   0x2   :  { %s16_s10 = sshll.u32 %s375_s9, 4  ;;  %p328_p0 = scmp.ne.s32.totalorder %s433_s1, %s327_s13  ;;  %s17_s10 = int_to_ptr.vmem [resolvable:$true] %s16_s10 }
   0x3   :  { %p331_p1 = scmp.lt.u32.totalorder %s327_s13, %s433_s1 }
   0x5   :  { %p333_p2 = pnand %p331_p1, %p328_p0 }
   0x7   :  { %336 = shalt.err (!%p333_p2)
}
   0x8   :  { %s337_s18 = scalar_lea.vmem %s17_s10, 2176  ;;  %p342_p4 = scmp.lt.s32.totalorder %s17_s10, %s17_s10 }
   0x9   :  { %p338_p3 = scmp.ne.s32.totalorder %s17_s10, %s337_s18  ;;  %p343_p5 = scmp.lt.s32.totalorder %s337_s18, %s337_s18 }
   0xb   :  { %p344_p6 = por %p343_p5, %p342_p4 }
   0xd   :  { %p345_p7 = pnand %p344_p6, %p338_p3 }
   0xf   :  { %348 = shalt.err (!%p345_p7)
}
  0x10   :  { %s376_s19 = smov 128   ;;  %s377_s20 = smov 8  }
  0x11   :  { %22 = dma.hbm_to_vmem [thread:$0]  %s433_s1, 2176, %s17_s10, [#allocation3], %s376_s19, %s376_s19, %s377_s20  }
  0x12   :  { %371 = dma.done.wait [#allocation3], 2176  }
  0x13   :  { %372 = vsyncadd [#allocation3], 4294965120  ;;  %v378_v0 = vmov 0.0   ;;  %vm379_vm0 = vmmov 0   ;;  %v380_v1 = vmov 0.0|0.0   ;;  %vm53_vm1 = vcmask 1043456  }
  0x14   :  { %252 = vmatprep.subr.mxu0 %v378_v0  ;;  %254 = vmatprep.mubr.msk.f32.mxu0 %vm379_vm0, %v378_v0  ;;  %vm49_vm2 = vcmask 31744   ;;  %v27_v2 = vld [vmem:[#allocation2] sm:$0xf]  ;;  %v29_v4 = vld [vmem:[#allocation2 + $0x8] sm:$0xff]  ;;  %v30_v5 = vld [vmem:[#allocation2 + $0x10] sm:$0xff]  ;;  %v198_v33 = vlaneseq }
  0x15   :  { %292 = vmatprep.subr.bf16.mxu1 %v380_v1  ;;  %289 = vmatprep.mubr.msk.f32.mxu1 %vm379_vm0, %v378_v0  ;;  %v26_v3 = vld [vmem:[%s432_s0] sm:$0xff]  ;;  %v31_v6 = vld [vmem:[#allocation2 + $0x18] sm:$0xff]  ;;  %v293_v8 = vpack.c.bf16 %v30_v5, %v29_v4  ;;  %v33_v10 = vld [vmem:[#allocation2 + $0x28] sm:$0xff]  ;;  %s381_s0 = smov [#allocation5]  }
  0x16   :  { %253 = vmatpush3.msk.msra.mxu0 %vm53_vm1, %v27_v2  ;;  %v32_v7 = vld [vmem:[#allocation2 + $0x20] sm:$0xff]  ;;  %v34_v11 = vld [vmem:[#allocation2 + $0x30] sm:$0xff]  ;;  %v35_v13 = vld [vmem:[#allocation2 + $0x38] sm:$0xff]  ;;  %v199_v34 = vand.u32 127, %v198_v33  ;;  %s221_s1 = sshll.u32 %s381_s0, 4  ;;  %s222_s1 = int_to_ptr.vmem [resolvable:$true] %s221_s1 }
  0x17   :  { %255 = vmatmul.mubr.msk.f32.vlgmr.msra.gmra.mrb[0].mxu0 %vm49_vm2, %v26_v3  ;;  %294 = vmatpush3.bf16.msra.mxu1 %v293_v8  ;;  %v296_v9 = vpack.c.bf16 %v32_v7, %v31_v6  ;;  %v299_v12 = vpack.c.bf16 %v34_v11, %v33_v10  ;;  %v36_v14 = vld [vmem:[#allocation2 + $0x40] sm:$0xff]  ;;  %v37_v16 = vld [vmem:[#allocation2 + $0x48] sm:$0xff]  ;;  %v38_v17 = vld [vmem:[#allocation2 + $0x50] sm:$0xff]  ;;  %s349_s25 = scalar_lea.vmem %s222_s1, 128  ;;  %p354_p9 = scmp.lt.s32.totalorder %s222_s1, %s222_s1 }
  0x18   :  { %295 = vmatprep.subr.bf16.mxu1 %v380_v1  ;;  %v302_v15 = vpack.c.bf16 %v36_v14, %v35_v13  ;;  %v305_v18 = vpack.c.bf16 %v38_v17, %v37_v16  ;;  %v39_v19 = vld [vmem:[#allocation2 + $0x58] sm:$0xff]  ;;  %v40_v20 = vld [vmem:[#allocation2 + $0x60] sm:$0xff]  ;;  %v41_v22 = vld [vmem:[#allocation2 + $0x68] sm:$0xff]  ;;  %vm200_vm3 = vcmp.ge.s32.totalorder %v199_v34, 1  ;;  %vm201_vm4 = vcmp.lt.s32.totalorder %v199_v34, 3  ;;  %p350_p8 = scmp.ne.s32.totalorder %s222_s1, %s349_s25  ;;  %p355_p10 = scmp.lt.s32.totalorder %s349_s25, %s349_s25 }
  0x19   :  { %v308_v21 = vpack.c.bf16 %v40_v20, %v39_v19  ;;  %v42_v23 = vld [vmem:[#allocation2 + $0x70] sm:$0xff]  ;;  %v43_v25 = vld [vmem:[#allocation2 + $0x78] sm:$0xff]  ;;  %v44_v26 = vld [vmem:[#allocation2 + $0x80] sm:$0xff] }
  0x1a   :  { %v311_v24 = vpack.c.bf16 %v42_v23, %v41_v22  ;;  %v314_v27 = vpack.c.bf16 %v44_v26, %v43_v25  ;;  %v230_v28 = vld [vmem:[#allocation2 + $0x4] ss:$0 sm:$0xff]  ;;  %vm412_vm5 = vmand %vm200_vm3, %vm201_vm4  ;;  %p356_p11 = por %p355_p10, %p354_p9 }
  0x1b   :  { %297 = vmatpush3.bf16.msra.mxu1 %v296_v9 }
  0x1c   :  { %298 = vmatprep.subr.bf16.mxu1 %v380_v1  ;;  %p357_p12 = pnand %p356_p11, %p350_p8 }
  0x1f   :  { %300 = vmatpush3.bf16.msra.mxu1 %v299_v12 }
  0x20   :  { %301 = vmatprep.subr.bf16.mxu1 %v380_v1 }
  0x23   :  { %303 = vmatpush3.bf16.msra.mxu1 %v302_v15 }
  0x24   :  { %304 = vmatprep.subr.bf16.mxu1 %v380_v1 }
  0x27   :  { %306 = vmatpush3.bf16.msra.mxu1 %v305_v18 }
  0x28   :  { %307 = vmatprep.subr.bf16.mxu1 %v380_v1 }
  0x2b   :  { %309 = vmatpush3.bf16.msra.mxu1 %v308_v21 }
  0x2c   :  { %310 = vmatprep.subr.bf16.mxu1 %v380_v1 }
  0x2f   :  { %312 = vmatpush3.bf16.msra.mxu1 %v311_v24 }
  0x30   :  { %313 = vmatprep.subr.bf16.mxu1 %v380_v1 }
  0x33   :  { %315 = vmatpush3.bf16.msra.mxu1 %v314_v27 }
  0xea   :  { %v123_v29 = vpop.f32.mrb[0].mxu0 }
  0xeb   :  { %v124_v30 = vadd.f32 %v230_v28, %v123_v29  ;;  %v256_v31 = vpop.f32.mrb[1].mxu0 }
  0xed   :  { %v127_v32 = vmax.f32 %v124_v30, 0.0 }
  0xef   :  { %290 = vmatmul.mubr.f32.vlgmr.msra.gmra.mrb[0].mxu1 %v127_v32 }
 0x1c2   :  { %v194_v36 = vpop.f32.mrb[0].mxu1 }
 0x1c3   :  { %v291_v37 = vpop.f32.mrb[1].mxu1  ;;  %v203_v38 = vsel %vm412_vm5, %v194_v36, -inf }
 0x1c4   :  { %204 = vmax.xlane.f32.xlu0 %v203_v38 }
 0x251   :  { %v205_v39 = vpop.xlane.xlu0 %204 }
 0x252   :  { %v206_v40 = vsub.f32 %v203_v38, %v205_v39 }
 0x254   :  { %v207_v41 = vmul.f32 1.442695, %v206_v40 }
 0x256   :  { %323 = vpow2.f32 %v207_v41 }
 0x260   :  { %v324_v42 = vpop.eup %323 }
 0x261   :  { %209 = vadd.xlane.f32.xlu0 %v324_v42 }
 0x2ee   :  { %v210_v43 = vpop.xlane.xlu0 %209 }
 0x2ef   :  { %325 = vrcp.f32 %v210_v43 }
 0x2f9   :  { %v326_v44 = vpop.eup %325 }
 0x2fa   :  { %v212_v45 = vmul.f32 %v326_v44, %v324_v42 }
 0x2fc   :  { %v213_v46 = vsel %vm412_vm5, %v212_v45, %v194_v36 }
 0x2fd   :  { %214 = vst [vmem:[#allocation5] sm:$0xff] %v213_v46 }
 0x2fe   :  { %360 = shalt.err (!%p357_p12)
}
 0x2ff   :  { %s361_s28 = scalar_lea.hbm %s434_s2, 128 }
 0x300   :  { %p362_p13 = scmp.ne.s32.totalorder %s434_s2, %s361_s28  ;;  %p365_p0 = scmp.lt.u32.totalorder %s361_s28, %s434_s2 }
 0x302   :  { %p367_p1 = pnand %p365_p0, %p362_p13 }
 0x304   :  { %370 = shalt.err (!%p367_p1)
}
 0x305   :  { %224 = dma.vmem_to_hbm [thread:$0]  %s222_s1, 128, %s434_s2, [#allocation4]  }
 0x306   :  { %373 = dma.done.wait [#allocation4], 128  }
 0x307   :  { %374 = vsyncadd [#allocation4], 4294967168 }
 0x308   :  { %228 = vsyncpa [#allocation3], 1 }
 0x309   :  { %229 = vsyncpa [#allocation4], 1 }

</bundles_post_ra>
